<compile_context>
chip_gen: v5e
topology: v5e:2x2
jax: 0.10.0
libtpu: 0.0.40
codegen_flags: <defaults>
</compile_context>

<pallas_src>
import jax
import jax.numpy as jnp
from jax.experimental import pallas as pl
from jax.experimental.pallas import tpu as pltpu


def _scale_mul_kernel(scale_ref, x_ref, o_ref):
    # scale_ref: (tc, 1), x_ref/o_ref: (tc, hw); lane-broadcast multiply.
    o_ref[...] = (scale_ref[...] * x_ref[...]).astype(o_ref.dtype)


def _round_up(x, m):
    return (x + m - 1) // m * m


def _choose_tc(nc, hw, itemsize, vmem_budget=12 * 1024 * 1024):
    """Pick the channel tile.

    Prefer exactly 2 grid steps (feeds both TensorCores on v7x, pipelines
    DMA/compute on v5e/v6e).  Fall back to a single full-array block when nc
    is not cleanly splittable (full-dim blocks are exempt from the (8,128)
    divisibility rule).  VMEM accounting uses the lane-padded widths and the
    default budget stays under v5e's 16 MiB scoped-VMEM default.
    """
    hw_pad = _round_up(hw, 128)
    if nc % 2 == 0 and (nc // 2) % 8 == 0:
        tc = nc // 2
    else:
        tc = nc

    def vmem_bytes(t):
        # double-buffered: x block + out block (lane-padded) + (t,1) scale
        # block padded to 128 lanes.
        return 2 * (2 * t * hw_pad + t * 128) * itemsize

    while vmem_bytes(tc) > vmem_budget and tc % 16 == 0:
        tc //= 2
    return tc


def channel_scale_mul(x280, x275):
    """Computes x280 * x275 with x280 (N,C,1,1) broadcast over x275 (N,C,H,W)."""
    n, c, h, w = x275.shape
    assert x280.shape == (n, c, 1, 1)
    hw = h * w
    nc = n * c
    out_dtype = jnp.result_type(x280.dtype, x275.dtype)

    x_flat = x275.reshape(nc, hw)   # (N*C, H*W)
    s_flat = x280.reshape(nc, 1)    # (N*C, 1)

    tc = _choose_tc(nc, hw, jnp.dtype(out_dtype).itemsize)
    grid = (nc // tc,)

    out_flat = pl.pallas_call(
        _scale_mul_kernel,
        out_shape=jax.ShapeDtypeStruct((nc, hw), out_dtype),
        grid_spec=pltpu.PrefetchScalarGridSpec(
            num_scalar_prefetch=0,
            grid=grid,
            in_specs=[
                # scale tiled with the same channel-block index as x
                pl.BlockSpec((tc, 1), lambda i: (i, 0)),
                pl.BlockSpec((tc, hw), lambda i: (i, 0)),
            ],
            out_specs=pl.BlockSpec((tc, hw), lambda i: (i, 0)),
        ),
        compiler_params=pltpu.CompilerParams(
            dimension_semantics=("parallel",)),
    )(s_flat, x_flat)

    return out_flat.reshape(n, c, h, w)


if __name__ == "__main__":
    key = jax.random.PRNGKey(0)
    k1, k2 = jax.random.split(key)
    # Shapes from the reference module: x275 (1, 960, 14, 14), x280 (1, 960, 1, 1)
    x275 = jax.random.normal(k1, (1, 960, 14, 14), dtype=jnp.float32)
    x280 = jax.random.normal(k2, (1, 960, 1, 1), dtype=jnp.float32)

    out = channel_scale_mul(x280, x275)
    jax.block_until_ready(out)

    # Sanity check against plain-JAX broadcast multiply
    ref = x280 * x275
    assert out.shape == ref.shape
    assert out.dtype == ref.dtype
    assert jnp.allclose(out, ref, atol=1e-6, rtol=1e-6)
    print("KERNEL_OK")
</pallas_src>

<mosaic_0001>
module attributes {stable_mosaic.version = 11 : i64} {
  func.func @_scale_mul_kernel(%arg0: i32, %arg1: memref<480x1xf32, #tpu.memory_space<vmem>>, %arg2: memref<480x196xf32, #tpu.memory_space<vmem>>, %arg3: memref<480x196xf32, #tpu.memory_space<vmem>>) attributes {dimension_semantics = [#tpu.dimension_semantics<parallel>], iteration_bounds = array<i64: 2>, scalar_prefetch = 0 : i64, scratch_operands = 0 : i64, tpu.core_type = #tpu.core_type<tc>, window_params = [{transform_indices = @transform_0, window_bounds = array<i64: 480, 1>}, {transform_indices = @transform_1, window_bounds = array<i64: 480, 196>}, {transform_indices = @transform_2, window_bounds = array<i64: 480, 196>}]} {
    %c0 = arith.constant 0 : index
    %c0_0 = arith.constant 0 : index
    %0 = vector.load %arg1[%c0, %c0_0] : memref<480x1xf32, #tpu.memory_space<vmem>>, vector<480x1xf32>
    %c0_1 = arith.constant 0 : index
    %c0_2 = arith.constant 0 : index
    %1 = vector.load %arg2[%c0_1, %c0_2] : memref<480x196xf32, #tpu.memory_space<vmem>>, vector<480x196xf32>
    %2 = vector.broadcast %0 : vector<480x1xf32> to vector<480x196xf32>
    %3 = arith.mulf %2, %1 : vector<480x196xf32>
    %c0_3 = arith.constant 0 : index
    %c0_4 = arith.constant 0 : index
    %4 = vector.load %arg3[%c0_3, %c0_4] : memref<480x196xf32, #tpu.memory_space<vmem>>, vector<480x196xf32>
    tpu.vector_store %arg3[%c0_3, %c0_4], %3 {strides = array<i32>} : memref<480x196xf32, #tpu.memory_space<vmem>>, vector<480x196xf32>,
    return
  }
  func.func @transform_0(%arg0: i32) -> (i32, i32) {
    %c0_i32 = arith.constant 0 : i32
    %c0_i32_0 = arith.constant 0 : i32
    return %arg0, %c0_i32 : i32, i32
  }
  func.func @transform_1(%arg0: i32) -> (i32, i32) {
    %c0_i32 = arith.constant 0 : i32
    %c0_i32_0 = arith.constant 0 : i32
    return %arg0, %c0_i32 : i32, i32
  }
  func.func @transform_2(%arg0: i32) -> (i32, i32) {
    %c0_i32 = arith.constant 0 : i32
    %c0_i32_0 = arith.constant 0 : i32
    return %arg0, %c0_i32 : i32, i32
  }
}

</mosaic_0001>

<bundles_post_ra>
// kernel: tpu_custom_call.1
= control target key start
LH: loop header
LB: loop body
LE: loop exit
PB: predicated region body
PF: predicated region fallthrough
CT: control target
= control target key end

     0   :  { %s1015_s9 = smov 0   ;;  %s1405_s0 = inlined_call_operand.vmem [shape: f32[960,1], index: 0, kind: input, shape index: {}]   ;;  %s1406_s1 = inlined_call_operand.vmem [shape: f32[960,196], index: 1, kind: input, shape index: {}]   ;;  %s1407_s2 = inlined_call_operand.vmem [shape: f32[960,196], index: 2, kind: output, shape index: {}]  }
   0x1 LB: > { %s965_s10 = sadd.s32 4294967295, %s997_s9   ;;  %p969_p0 = scmp.ge.s32.totalorder %s997_s9, 1  ;;  %s997_s9 = sphi %s1015_s9, %s12_s9  }
   0x2   : > { %p125_p1 = scmp.lt.s32.totalorder %s997_s9, 3 }
   0x4   : > { %p126_p2 = pnand %p969_p0, %p125_p1 }
   0x5   : > { %s154_s11 = smul.u32 (!%p126_p2), 60, %s965_s10 }
   0x6   : > { %129 = sbr.rel (%p126_p2) target bundleno = 288 (0x120), region = 28 }
   0x7   : > { %p155_p3 = scmp.lt.s32.totalorder (!%p126_p2), %s154_s11, 119 }
   0xb   : > { %v999_v0 = vmov 0   ;;  %s1409_s11 = smov (!%p155_p3, %s154_s11), 119  ;;  %vm775_vm0 = vcmask 556032  }
   0xc   : > { %990 = vset.pattern.permute.xlu2 %v999_v0  ;;  %989 = vset.pattern.permute.xlu1 %v999_v0  ;;  %s970_s12 = sshll.u32 %s1409_s11, 3  ;;  %s977_s16 = sshll.u32 %s1409_s11, 4 }
   0xd   : > { %988 = vset.pattern.permute.xlu0 %v999_v0  ;;  %s1029_s15 = scalar_lea.vmem %s1405_s0, %s970_s12  ;;  %s1068_s19 = scalar_lea.vmem %s1406_s1, %s977_s16 }
   0xe   : > { %v178_v1 = vld [vmem:[%s1029_s15 + $0x20] sm:$0xff]  ;;  %v176_v2 = vld [vmem:[%s1029_s15 + $0x10] sm:$0xff]  ;;  %v179_v4 = vld [vmem:[%s1029_s15 + $0x28] sm:$0xff]  ;;  %s1078_s22 = scalar_lea.vmem %s1407_s2, %s977_s16 }
   0xf   : > { %v174_v3 = vld [vmem:[%s1029_s15] sm:$0xff]  ;;  %376 = vperm.xlu2 %990, %v178_v1   ;;  %366 = vperm.xlu1 %989, %v176_v2   ;;  %v177_v5 = vld [vmem:[%s1029_s15 + $0x18] sm:$0xff]  ;;  %v175_v6 = vld [vmem:[%s1029_s15 + $0x8] sm:$0xff] }
  0x10   : > { %356 = vperm.xlu0 %988, %v174_v3   ;;  %v182_v7 = vld [vmem:[%s1029_s15 + $0x40] sm:$0xff]  ;;  %v181_v8 = vld [vmem:[%s1029_s15 + $0x38] sm:$0xff]  ;;  %v180_v9 = vld [vmem:[%s1029_s15 + $0x30] sm:$0xff] }
  0x11   : > { %v185_v10 = vld [vmem:[%s1029_s15 + $0x58] sm:$0xff]  ;;  %v184_v11 = vld [vmem:[%s1029_s15 + $0x50] sm:$0xff]  ;;  %v183_v12 = vld [vmem:[%s1029_s15 + $0x48] sm:$0xff] }
  0x12   : > { %v188_v13 = vld [vmem:[%s1029_s15 + $0x70] sm:$0xff]  ;;  %v187_v14 = vld [vmem:[%s1029_s15 + $0x68] sm:$0xff]  ;;  %v186_v15 = vld [vmem:[%s1029_s15 + $0x60] sm:$0xff] }
  0x13   : > { %v191_v16 = vld [vmem:[%s1029_s15 + $0x88] sm:$0xff]  ;;  %v190_v17 = vld [vmem:[%s1029_s15 + $0x80] sm:$0xff]  ;;  %v189_v18 = vld [vmem:[%s1029_s15 + $0x78] sm:$0xff] }
  0x14   : > { %v194_v19 = vld [vmem:[%s1029_s15 + $0xa0] sm:$0xff]  ;;  %v193_v20 = vld [vmem:[%s1029_s15 + $0x98] sm:$0xff]  ;;  %v192_v21 = vld [vmem:[%s1029_s15 + $0x90] sm:$0xff] }
  0x15   : > { %v197_v22 = vld [vmem:[%s1029_s15 + $0xb8] sm:$0xff]  ;;  %v196_v23 = vld [vmem:[%s1029_s15 + $0xb0] sm:$0xff]  ;;  %v195_v24 = vld [vmem:[%s1029_s15 + $0xa8] sm:$0xff] }
  0x16   : > { %v200_v25 = vld [vmem:[%s1029_s15 + $0xd0] sm:$0xff]  ;;  %v199_v26 = vld [vmem:[%s1029_s15 + $0xc8] sm:$0xff]  ;;  %v198_v27 = vld [vmem:[%s1029_s15 + $0xc0] sm:$0xff] }
  0x17   : > { %381 = vperm.xlu2 %990, %v179_v4   ;;  %371 = vperm.xlu1 %989, %v177_v5   ;;  %v203_v28 = vld [vmem:[%s1029_s15 + $0xe8] sm:$0xff]  ;;  %v202_v29 = vld [vmem:[%s1029_s15 + $0xe0] sm:$0xff]  ;;  %v201_v30 = vld [vmem:[%s1029_s15 + $0xd8] sm:$0xff] }
  0x18   : > { %361 = vperm.xlu0 %988, %v175_v6   ;;  %v206_v31 = vld [vmem:[%s1029_s15 + $0x100] sm:$0xff]  ;;  %v205_v32 = vld [vmem:[%s1029_s15 + $0xf8] sm:$0xff]  ;;  %v204_v33 = vld [vmem:[%s1029_s15 + $0xf0] sm:$0xff] }
  0x19   : > { %v209_v34 = vld [vmem:[%s1029_s15 + $0x118] sm:$0xff]  ;;  %v208_v35 = vld [vmem:[%s1029_s15 + $0x110] sm:$0xff]  ;;  %v207_v36 = vld [vmem:[%s1029_s15 + $0x108] sm:$0xff] }
  0x1a   : > { %v242_v37 = vld [vmem:[%s1068_s19 + $0x40] sm:$0xff]  ;;  %v243_v38 = vld [vmem:[%s1068_s19 + $0x48] sm:$0xff]  ;;  %v212_v42 = vld [vmem:[%s1029_s15 + $0x130] sm:$0xff] }
  0x1b   : > { %v211_v43 = vld [vmem:[%s1029_s15 + $0x128] sm:$0xff]  ;;  %v210_v44 = vld [vmem:[%s1029_s15 + $0x120] sm:$0xff]  ;;  %v244_v45 = vld [vmem:[%s1068_s19 + $0x50] sm:$0xff] }
  0x1c   : > { %v245_v46 = vld [vmem:[%s1068_s19 + $0x58] sm:$0xff]  ;;  %v215_v50 = vld [vmem:[%s1029_s15 + $0x148] sm:$0xff]  ;;  %v214_v51 = vld [vmem:[%s1029_s15 + $0x140] sm:$0xff] }
  0x1d   : > { %v213_v52 = vld [vmem:[%s1029_s15 + $0x138] sm:$0xff]  ;;  %v250_v53 = vld [vmem:[%s1068_s19 + $0x80] sm:$0xff]  ;;  %v251_v54 = vld [vmem:[%s1068_s19 + $0x88] sm:$0xff] }
  0x1e   : > { %v218_v58 = vld [vmem:[%s1029_s15 + $0x160] sm:$0xff]  ;;  %v217_v59 = vld [vmem:[%s1029_s15 + $0x158] sm:$0xff]  ;;  %v216_v60 = vld [vmem:[%s1029_s15 + $0x150] sm:$0xff] }
  0x1f   : > { %396 = vperm.xlu2 %990, %v182_v7   ;;  %391 = vperm.xlu1 %989, %v181_v8   ;;  %v256_v61 = vld [vmem:[%s1068_s19 + $0xb0] sm:$0xff]  ;;  %v257_v62 = vld [vmem:[%s1068_s19 + $0xb8] sm:$0xff]  ;;  %v238_v63 = vld [vmem:[%s1068_s19 + $0x20] sm:$0xff] }
  0x20   : > { %386 = vperm.xlu0 %988, %v180_v9   ;;  %v239_v0 = vld [vmem:[%s1068_s19 + $0x28] sm:$0xff]  ;;  %v234_v3 = vld [vmem:[%s1068_s19] sm:$0xff] }
  0x21   : > { %v235_v7 = vld [vmem:[%s1068_s19 + $0x8] sm:$0xff] }
  0x27   : > { %411 = vperm.xlu2 %990, %v185_v10   ;;  %406 = vperm.xlu1 %989, %v184_v11   ;;  %v221_v11 = vld [vmem:[%s1029_s15 + $0x178] sm:$0xff] }
  0x28   : > { %401 = vperm.xlu0 %988, %v183_v12   ;;  %v220_v12 = vld [vmem:[%s1029_s15 + $0x170] sm:$0xff] }
  0x2f   : > { %426 = vperm.xlu2 %990, %v188_v13   ;;  %421 = vperm.xlu1 %989, %v187_v14   ;;  %v219_v14 = vld [vmem:[%s1029_s15 + $0x168] sm:$0xff] }
  0x30   : > { %416 = vperm.xlu0 %988, %v186_v15   ;;  %v262_v15 = vld [vmem:[%s1068_s19 + $0xe0] sm:$0xff] }
  0x37   : > { %441 = vperm.xlu2 %990, %v191_v16   ;;  %436 = vperm.xlu1 %989, %v190_v17   ;;  %v263_v16 = vld [vmem:[%s1068_s19 + $0xe8] sm:$0xff]  ;;  %v240_v17 = vld [vmem:[%s1068_s19 + $0x30] sm:$0xff] }
  0x38   : > { %431 = vperm.xlu0 %988, %v189_v18   ;;  %v241_v18 = vld [vmem:[%s1068_s19 + $0x38] sm:$0xff] }
  0x3f   : > { %456 = vperm.xlu2 %990, %v194_v19   ;;  %451 = vperm.xlu1 %989, %v193_v20  }
  0x40   : > { %446 = vperm.xlu0 %988, %v192_v21   ;;  %v236_v21 = vld [vmem:[%s1068_s19 + $0x10] sm:$0xff] }
  0x47   : > { %471 = vperm.xlu2 %990, %v197_v22   ;;  %466 = vperm.xlu1 %989, %v196_v23  }
  0x48   : > { %461 = vperm.xlu0 %988, %v195_v24  }
  0x4f   : > { %486 = vperm.xlu2 %990, %v200_v25   ;;  %481 = vperm.xlu1 %989, %v199_v26   ;;  %v237_v25 = vld [vmem:[%s1068_s19 + $0x18] sm:$0xff] }
  0x50   : > { %476 = vperm.xlu0 %988, %v198_v27  }
  0x57   : > { %501 = vperm.xlu2 %990, %v203_v28   ;;  %496 = vperm.xlu1 %989, %v202_v29   ;;  %v224_v29 = vld [vmem:[%s1029_s15 + $0x190] sm:$0xff] }
  0x58   : > { %491 = vperm.xlu0 %988, %v201_v30   ;;  %v223_v30 = vld [vmem:[%s1029_s15 + $0x188] sm:$0xff] }
  0x5f   : > { %516 = vperm.xlu2 %990, %v206_v31   ;;  %511 = vperm.xlu1 %989, %v205_v32   ;;  %v222_v32 = vld [vmem:[%s1029_s15 + $0x180] sm:$0xff] }
  0x60   : > { %506 = vperm.xlu0 %988, %v204_v33   ;;  %v268_v33 = vld [vmem:[%s1068_s19 + $0x110] sm:$0xff] }
  0x67   : > { %531 = vperm.xlu2 %990, %v209_v34   ;;  %526 = vperm.xlu1 %989, %v208_v35   ;;  %v269_v34 = vld [vmem:[%s1068_s19 + $0x118] sm:$0xff]  ;;  %v248_v35 = vld [vmem:[%s1068_s19 + $0x70] sm:$0xff] }
  0x68   : > { %521 = vperm.xlu0 %988, %v207_v36   ;;  %v249_v36 = vld [vmem:[%s1068_s19 + $0x78] sm:$0xff] }
  0x69   : > { %v377_v39 = vpop.permute.xlu2 %376 }
  0x6a   : > { %v662_v40 = vmul.f32 %v377_v39, %v242_v37  ;;  %v663_v41 = vmul.f32 %v377_v39, %v243_v38  ;;  %v246_v39 = vld [vmem:[%s1068_s19 + $0x60] sm:$0xff] }
  0x6c   : > { %783 = vst [vmem:[%s1078_s22 + $0x40] sm:$0xff] %v662_v40 }
  0x6d   : > { %784 = vst.msk [vmem:[%s1078_s22 + $0x48] sm:$0xff] %vm775_vm0, %v663_v41 }
  0x6f   : > { %546 = vperm.xlu2 %990, %v212_v42   ;;  %541 = vperm.xlu1 %989, %v211_v43   ;;  %v247_v43 = vld [vmem:[%s1068_s19 + $0x68] sm:$0xff] }
  0x70   : > { %536 = vperm.xlu0 %988, %v210_v44  }
  0x71   : > { %v382_v47 = vpop.permute.xlu2 %381 }
  0x72   : > { %v664_v48 = vmul.f32 %v382_v47, %v244_v45  ;;  %v665_v49 = vmul.f32 %v382_v47, %v245_v46  ;;  %v227_v47 = vld [vmem:[%s1029_s15 + $0x1a8] sm:$0xff] }
  0x74   : > { %785 = vst [vmem:[%s1078_s22 + $0x50] sm:$0xff] %v664_v48  ;;  %v226_v48 = vld [vmem:[%s1029_s15 + $0x1a0] sm:$0xff] }
  0x75   : > { %786 = vst.msk [vmem:[%s1078_s22 + $0x58] sm:$0xff] %vm775_vm0, %v665_v49 }
  0x77   : > { %561 = vperm.xlu2 %990, %v215_v50   ;;  %556 = vperm.xlu1 %989, %v214_v51   ;;  %v225_v50 = vld [vmem:[%s1029_s15 + $0x198] sm:$0xff]  ;;  %v274_v51 = vld [vmem:[%s1068_s19 + $0x140] sm:$0xff] }
  0x78   : > { %551 = vperm.xlu0 %988, %v213_v52   ;;  %v275_v52 = vld [vmem:[%s1068_s19 + $0x148] sm:$0xff] }
  0x79   : > { %v397_v55 = vpop.permute.xlu2 %396 }
  0x7a   : > { %v670_v56 = vmul.f32 %v397_v55, %v250_v53  ;;  %v671_v57 = vmul.f32 %v397_v55, %v251_v54  ;;  %v254_v53 = vld [vmem:[%s1068_s19 + $0xa0] sm:$0xff]  ;;  %v255_v54 = vld [vmem:[%s1068_s19 + $0xa8] sm:$0xff] }
  0x7c   : > { %791 = vst [vmem:[%s1078_s22 + $0x80] sm:$0xff] %v670_v56 }
  0x7d   : > { %792 = vst.msk [vmem:[%s1078_s22 + $0x88] sm:$0xff] %vm775_vm0, %v671_v57  ;;  %v252_v57 = vld [vmem:[%s1068_s19 + $0x90] sm:$0xff] }
  0x7f   : > { %576 = vperm.xlu2 %990, %v218_v58   ;;  %571 = vperm.xlu1 %989, %v217_v59  }
  0x80   : > { %566 = vperm.xlu0 %988, %v216_v60  }
  0x81   : > { %v412_v1 = vpop.permute.xlu2 %411  ;;  %v367_v2 = vpop.permute.xlu1 %366 }
  0x82   : > { %v676_v4 = vmul.f32 %v412_v1, %v256_v61  ;;  %v677_v5 = vmul.f32 %v412_v1, %v257_v62  ;;  %v658_v6 = vmul.f32 %v367_v2, %v238_v63  ;;  %v357_v8 = vpop.permute.xlu0 %356  ;;  %v659_v9 = vmul.f32 %v367_v2, %v239_v0  ;;  %v253_v61 = vld [vmem:[%s1068_s19 + $0x98] sm:$0xff]  ;;  %v230_v1 = vld [vmem:[%s1029_s15 + $0x1c0] sm:$0xff] }
  0x83   : > { %v654_v10 = vmul.f32 %v357_v8, %v234_v3  ;;  %v655_v13 = vmul.f32 %v357_v8, %v235_v7  ;;  %v229_v2 = vld [vmem:[%s1029_s15 + $0x1b8] sm:$0xff]  ;;  %v260_v7 = vld [vmem:[%s1068_s19 + $0xd0] sm:$0xff] }
  0x84   : > { %797 = vst [vmem:[%s1078_s22 + $0xb0] sm:$0xff] %v676_v4  ;;  %v228_v4 = vld [vmem:[%s1029_s15 + $0x1b0] sm:$0xff]  ;;  %v261_v8 = vld [vmem:[%s1068_s19 + $0xd8] sm:$0xff] }
  0x85   : > { %798 = vst.msk [vmem:[%s1078_s22 + $0xb8] sm:$0xff] %vm775_vm0, %v677_v5  ;;  %v280_v5 = vld [vmem:[%s1068_s19 + $0x170] sm:$0xff] }
  0x86   : > { %779 = vst [vmem:[%s1078_s22 + $0x20] sm:$0xff] %v658_v6  ;;  %v281_v6 = vld [vmem:[%s1068_s19 + $0x178] sm:$0xff] }
  0x87   : > { %780 = vst.msk [vmem:[%s1078_s22 + $0x28] sm:$0xff] %vm775_vm0, %v659_v9  ;;  %591 = vperm.xlu2 %990, %v221_v11   ;;  %586 = vperm.xlu1 %989, %v220_v12   ;;  %v258_v11 = vld [vmem:[%s1068_s19 + $0xc0] sm:$0xff] }
  0x88   : > { %774 = vst [vmem:[%s1078_s22] sm:$0xff] %v654_v10  ;;  %581 = vperm.xlu0 %988, %v219_v14  }
  0x89   : > { %776 = vst.msk [vmem:[%s1078_s22 + $0x8] sm:$0xff] %vm775_vm0, %v655_v13  ;;  %v427_v19 = vpop.permute.xlu2 %426  ;;  %v372_v20 = vpop.permute.xlu1 %371 }
  0x8a   : > { %v682_v22 = vmul.f32 %v427_v19, %v262_v15  ;;  %v683_v23 = vmul.f32 %v427_v19, %v263_v16  ;;  %v660_v24 = vmul.f32 %v372_v20, %v240_v17  ;;  %v362_v26 = vpop.permute.xlu0 %361  ;;  %v661_v27 = vmul.f32 %v372_v20, %v241_v18  ;;  %v259_v15 = vld [vmem:[%s1068_s19 + $0xc8] sm:$0xff]  ;;  %v233_v19 = vld [vmem:[%s1029_s15 + $0x1d8] sm:$0xff]  ;;  %v232_v20 = vld [vmem:[%s1029_s15 + $0x1d0] sm:$0xff] }
  0x8b   : > { %v656_v28 = vmul.f32 %v362_v26, %v236_v21  ;;  %v657_v31 = vmul.f32 %v362_v26, %v237_v25  ;;  %v266_v25 = vld [vmem:[%s1068_s19 + $0x100] sm:$0xff]  ;;  %v267_v26 = vld [vmem:[%s1068_s19 + $0x108] sm:$0xff] }
  0x8c   : > { %803 = vst [vmem:[%s1078_s22 + $0xe0] sm:$0xff] %v682_v22  ;;  %v231_v22 = vld [vmem:[%s1029_s15 + $0x1c8] sm:$0xff] }
  0x8d   : > { %804 = vst.msk [vmem:[%s1078_s22 + $0xe8] sm:$0xff] %vm775_vm0, %v683_v23  ;;  %v286_v23 = vld [vmem:[%s1068_s19 + $0x1a0] sm:$0xff] }
  0x8e   : > { %781 = vst [vmem:[%s1078_s22 + $0x30] sm:$0xff] %v660_v24  ;;  %v287_v24 = vld [vmem:[%s1068_s19 + $0x1a8] sm:$0xff] }
  0x8f   : > { %782 = vst.msk [vmem:[%s1078_s22 + $0x38] sm:$0xff] %vm775_vm0, %v661_v27  ;;  %606 = vperm.xlu2 %990, %v224_v29   ;;  %601 = vperm.xlu1 %989, %v223_v30   ;;  %v264_v29 = vld [vmem:[%s1068_s19 + $0xf0] sm:$0xff] }
  0x90   : > { %777 = vst [vmem:[%s1078_s22 + $0x10] sm:$0xff] %v656_v28  ;;  %596 = vperm.xlu0 %988, %v222_v32  }
  0x91   : > { %778 = vst.msk [vmem:[%s1078_s22 + $0x18] sm:$0xff] %vm775_vm0, %v657_v31  ;;  %v442_v37 = vpop.permute.xlu2 %441  ;;  %v392_v38 = vpop.permute.xlu1 %391 }
  0x92   : > { %v688_v40 = vmul.f32 %v442_v37, %v268_v33  ;;  %v689_v41 = vmul.f32 %v442_v37, %v269_v34  ;;  %v668_v42 = vmul.f32 %v392_v38, %v248_v35  ;;  %v387_v44 = vpop.permute.xlu0 %386  ;;  %v669_v45 = vmul.f32 %v392_v38, %v249_v36  ;;  %v265_v33 = vld [vmem:[%s1068_s19 + $0xf8] sm:$0xff]  ;;  %v292_v38 = vld [vmem:[%s1068_s19 + $0x1d0] sm:$0xff] }
  0x93   : > { %v666_v46 = vmul.f32 %v387_v44, %v246_v39  ;;  %v667_v49 = vmul.f32 %v387_v44, %v247_v43  ;;  %v293_v39 = vld [vmem:[%s1068_s19 + $0x1d8] sm:$0xff]  ;;  %v270_v44 = vld [vmem:[%s1068_s19 + $0x120] sm:$0xff] }
  0x94   : > { %809 = vst [vmem:[%s1078_s22 + $0x110] sm:$0xff] %v688_v40  ;;  %v272_v40 = vld [vmem:[%s1068_s19 + $0x130] sm:$0xff] }
  0x95   : > { %810 = vst.msk [vmem:[%s1078_s22 + $0x118] sm:$0xff] %vm775_vm0, %v689_v41  ;;  %v273_v41 = vld [vmem:[%s1068_s19 + $0x138] sm:$0xff] }
  0x96   : > { %789 = vst [vmem:[%s1078_s22 + $0x70] sm:$0xff] %v668_v42 }
  0x97   : > { %790 = vst.msk [vmem:[%s1078_s22 + $0x78] sm:$0xff] %vm775_vm0, %v669_v45  ;;  %621 = vperm.xlu2 %990, %v227_v47   ;;  %616 = vperm.xlu1 %989, %v226_v48   ;;  %v271_v48 = vld [vmem:[%s1068_s19 + $0x128] sm:$0xff] }
  0x98   : > { %787 = vst [vmem:[%s1078_s22 + $0x60] sm:$0xff] %v666_v46  ;;  %611 = vperm.xlu0 %988, %v225_v50  }
  0x99   : > { %788 = vst.msk [vmem:[%s1078_s22 + $0x68] sm:$0xff] %vm775_vm0, %v667_v49  ;;  %v457_v55 = vpop.permute.xlu2 %456  ;;  %v407_v56 = vpop.permute.xlu1 %406 }
  0x9a   : > { %v694_v58 = vmul.f32 %v457_v55, %v274_v51  ;;  %v695_v59 = vmul.f32 %v457_v55, %v275_v52  ;;  %v674_v60 = vmul.f32 %v407_v56, %v254_v53  ;;  %v402_v62 = vpop.permute.xlu0 %401  ;;  %v675_v63 = vmul.f32 %v407_v56, %v255_v54  ;;  %v298_v53 = vld [vmem:[%s1068_s19 + $0x200] sm:$0xff]  ;;  %v299_v54 = vld [vmem:[%s1068_s19 + $0x208] sm:$0xff] }
  0x9b   : > { %v672_v0 = vmul.f32 %v402_v62, %v252_v57  ;;  %v673_v3 = vmul.f32 %v402_v62, %v253_v61  ;;  %v278_v55 = vld [vmem:[%s1068_s19 + $0x160] sm:$0xff]  ;;  %v279_v56 = vld [vmem:[%s1068_s19 + $0x168] sm:$0xff] }
  0x9c   : > { %815 = vst [vmem:[%s1078_s22 + $0x140] sm:$0xff] %v694_v58 }
  0x9d   : > { %816 = vst.msk [vmem:[%s1078_s22 + $0x148] sm:$0xff] %vm775_vm0, %v695_v59  ;;  %v276_v59 = vld [vmem:[%s1068_s19 + $0x150] sm:$0xff] }
  0x9e   : > { %795 = vst [vmem:[%s1078_s22 + $0xa0] sm:$0xff] %v674_v60 }
  0x9f   : > { %796 = vst.msk [vmem:[%s1078_s22 + $0xa8] sm:$0xff] %vm775_vm0, %v675_v63  ;;  %636 = vperm.xlu2 %990, %v230_v1   ;;  %631 = vperm.xlu1 %989, %v229_v2   ;;  %v277_v63 = vld [vmem:[%s1068_s19 + $0x158] sm:$0xff] }
  0xa0   : > { %793 = vst [vmem:[%s1078_s22 + $0x90] sm:$0xff] %v672_v0  ;;  %626 = vperm.xlu0 %988, %v228_v4   ;;  %v304_v4 = vld [vmem:[%s1068_s19 + $0x230] sm:$0xff] }
  0xa1   : > { %794 = vst.msk [vmem:[%s1078_s22 + $0x98] sm:$0xff] %vm775_vm0, %v673_v3  ;;  %v472_v9 = vpop.permute.xlu2 %471  ;;  %v422_v10 = vpop.permute.xlu1 %421 }
  0xa2   : > { %v700_v12 = vmul.f32 %v472_v9, %v280_v5  ;;  %v701_v13 = vmul.f32 %v472_v9, %v281_v6  ;;  %v680_v14 = vmul.f32 %v422_v10, %v260_v7  ;;  %v417_v16 = vpop.permute.xlu0 %416  ;;  %v681_v17 = vmul.f32 %v422_v10, %v261_v8  ;;  %v305_v5 = vld [vmem:[%s1068_s19 + $0x238] sm:$0xff]  ;;  %v284_v6 = vld [vmem:[%s1068_s19 + $0x190] sm:$0xff]  ;;  %v282_v10 = vld [vmem:[%s1068_s19 + $0x180] sm:$0xff] }
  0xa3   : > { %v678_v18 = vmul.f32 %v417_v16, %v258_v11  ;;  %v679_v21 = vmul.f32 %v417_v16, %v259_v15  ;;  %v285_v7 = vld [vmem:[%s1068_s19 + $0x198] sm:$0xff] }
  0xa4   : > { %821 = vst [vmem:[%s1078_s22 + $0x170] sm:$0xff] %v700_v12 }
  0xa5   : > { %822 = vst.msk [vmem:[%s1078_s22 + $0x178] sm:$0xff] %vm775_vm0, %v701_v13 }
  0xa6   : > { %801 = vst [vmem:[%s1078_s22 + $0xd0] sm:$0xff] %v680_v14  ;;  %v283_v14 = vld [vmem:[%s1068_s19 + $0x188] sm:$0xff] }
  0xa7   : > { %802 = vst.msk [vmem:[%s1078_s22 + $0xd8] sm:$0xff] %vm775_vm0, %v681_v17  ;;  %651 = vperm.xlu2 %990, %v233_v19   ;;  %646 = vperm.xlu1 %989, %v232_v20   ;;  %v310_v19 = vld [vmem:[%s1068_s19 + $0x260] sm:$0xff]  ;;  %v311_v20 = vld [vmem:[%s1068_s19 + $0x268] sm:$0xff] }
  0xa8   : > { %799 = vst [vmem:[%s1078_s22 + $0xc0] sm:$0xff] %v678_v18  ;;  %641 = vperm.xlu0 %988, %v231_v22   ;;  %v291_v22 = vld [vmem:[%s1068_s19 + $0x1c8] sm:$0xff] }
  0xa9   : > { %800 = vst.msk [vmem:[%s1078_s22 + $0xc8] sm:$0xff] %vm775_vm0, %v679_v21  ;;  %v487_v27 = vpop.permute.xlu2 %486  ;;  %v437_v28 = vpop.permute.xlu1 %436  ;;  %v290_v21 = vld [vmem:[%s1068_s19 + $0x1c0] sm:$0xff] }
  0xaa   : > { %v706_v30 = vmul.f32 %v487_v27, %v286_v23  ;;  %v707_v31 = vmul.f32 %v487_v27, %v287_v24  ;;  %v686_v32 = vmul.f32 %v437_v28, %v266_v25  ;;  %v432_v34 = vpop.permute.xlu0 %431  ;;  %v687_v35 = vmul.f32 %v437_v28, %v267_v26  ;;  %v288_v25 = vld [vmem:[%s1068_s19 + $0x1b0] sm:$0xff] }
  0xab   : > { %v684_v36 = vmul.f32 %v432_v34, %v264_v29  ;;  %v685_v37 = vmul.f32 %v432_v34, %v265_v33  ;;  %v289_v29 = vld [vmem:[%s1068_s19 + $0x1b8] sm:$0xff]  ;;  %v316_v34 = vld [vmem:[%s1068_s19 + $0x290] sm:$0xff] }
  0xac   : > { %827 = vst [vmem:[%s1078_s22 + $0x1a0] sm:$0xff] %v706_v30 }
  0xad   : > { %828 = vst.msk [vmem:[%s1078_s22 + $0x1a8] sm:$0xff] %vm775_vm0, %v707_v31 }
  0xae   : > { %807 = vst [vmem:[%s1078_s22 + $0x100] sm:$0xff] %v686_v32 }
  0xaf   : > { %808 = vst.msk [vmem:[%s1078_s22 + $0x108] sm:$0xff] %vm775_vm0, %v687_v35  ;;  %v317_v35 = vld [vmem:[%s1068_s19 + $0x298] sm:$0xff] }
  0xb0   : > { %805 = vst [vmem:[%s1078_s22 + $0xf0] sm:$0xff] %v684_v36  ;;  %v296_v36 = vld [vmem:[%s1068_s19 + $0x1f0] sm:$0xff] }
  0xb1   : > { %806 = vst.msk [vmem:[%s1078_s22 + $0xf8] sm:$0xff] %vm775_vm0, %v685_v37  ;;  %v502_v42 = vpop.permute.xlu2 %501  ;;  %v452_v43 = vpop.permute.xlu1 %451  ;;  %v297_v37 = vld [vmem:[%s1068_s19 + $0x1f8] sm:$0xff] }
  0xb2   : > { %v712_v45 = vmul.f32 %v502_v42, %v292_v38  ;;  %v713_v46 = vmul.f32 %v502_v42, %v293_v39  ;;  %v692_v47 = vmul.f32 %v452_v43, %v272_v40  ;;  %v447_v49 = vpop.permute.xlu0 %446  ;;  %v693_v50 = vmul.f32 %v452_v43, %v273_v41  ;;  %v294_v40 = vld [vmem:[%s1068_s19 + $0x1e0] sm:$0xff] }
  0xb3   : > { %v690_v51 = vmul.f32 %v447_v49, %v270_v44  ;;  %v691_v52 = vmul.f32 %v447_v49, %v271_v48  ;;  %v295_v44 = vld [vmem:[%s1068_s19 + $0x1e8] sm:$0xff]  ;;  %v322_v49 = vld [vmem:[%s1068_s19 + $0x2c0] sm:$0xff] }
  0xb4   : > { %833 = vst [vmem:[%s1078_s22 + $0x1d0] sm:$0xff] %v712_v45 }
  0xb5   : > { %834 = vst.msk [vmem:[%s1078_s22 + $0x1d8] sm:$0xff] %vm775_vm0, %v713_v46 }
  0xb6   : > { %813 = vst [vmem:[%s1078_s22 + $0x130] sm:$0xff] %v692_v47 }
  0xb7   : > { %814 = vst.msk [vmem:[%s1078_s22 + $0x138] sm:$0xff] %vm775_vm0, %v693_v50  ;;  %v323_v50 = vld [vmem:[%s1068_s19 + $0x2c8] sm:$0xff] }
  0xb8   : > { %811 = vst [vmem:[%s1078_s22 + $0x120] sm:$0xff] %v690_v51  ;;  %v302_v51 = vld [vmem:[%s1068_s19 + $0x220] sm:$0xff] }
  0xb9   : > { %812 = vst.msk [vmem:[%s1078_s22 + $0x128] sm:$0xff] %vm775_vm0, %v691_v52  ;;  %v517_v57 = vpop.permute.xlu2 %516  ;;  %v467_v58 = vpop.permute.xlu1 %466  ;;  %v303_v52 = vld [vmem:[%s1068_s19 + $0x228] sm:$0xff] }
  0xba   : > { %v718_v60 = vmul.f32 %v517_v57, %v298_v53  ;;  %v719_v61 = vmul.f32 %v517_v57, %v299_v54  ;;  %v698_v62 = vmul.f32 %v467_v58, %v278_v55  ;;  %v462_v0 = vpop.permute.xlu0 %461  ;;  %v699_v1 = vmul.f32 %v467_v58, %v279_v56  ;;  %v300_v55 = vld [vmem:[%s1068_s19 + $0x210] sm:$0xff] }
  0xbb   : > { %v696_v2 = vmul.f32 %v462_v0, %v276_v59  ;;  %v697_v3 = vmul.f32 %v462_v0, %v277_v63  ;;  %v301_v59 = vld [vmem:[%s1068_s19 + $0x218] sm:$0xff]  ;;  %v328_v0 = vld [vmem:[%s1068_s19 + $0x2f0] sm:$0xff] }
  0xbc   : > { %839 = vst [vmem:[%s1078_s22 + $0x200] sm:$0xff] %v718_v60 }
  0xbd   : > { %840 = vst.msk [vmem:[%s1078_s22 + $0x208] sm:$0xff] %vm775_vm0, %v719_v61 }
  0xbe   : > { %819 = vst [vmem:[%s1078_s22 + $0x160] sm:$0xff] %v698_v62 }
  0xbf   : > { %820 = vst.msk [vmem:[%s1078_s22 + $0x168] sm:$0xff] %vm775_vm0, %v699_v1  ;;  %v329_v1 = vld [vmem:[%s1068_s19 + $0x2f8] sm:$0xff] }
  0xc0   : > { %817 = vst [vmem:[%s1078_s22 + $0x150] sm:$0xff] %v696_v2  ;;  %v308_v2 = vld [vmem:[%s1068_s19 + $0x250] sm:$0xff] }
  0xc1   : > { %818 = vst.msk [vmem:[%s1078_s22 + $0x158] sm:$0xff] %vm775_vm0, %v697_v3  ;;  %v532_v8 = vpop.permute.xlu2 %531  ;;  %v482_v9 = vpop.permute.xlu1 %481  ;;  %v309_v3 = vld [vmem:[%s1068_s19 + $0x258] sm:$0xff] }
  0xc2   : > { %v724_v11 = vmul.f32 %v532_v8, %v304_v4  ;;  %v725_v12 = vmul.f32 %v532_v8, %v305_v5  ;;  %v704_v13 = vmul.f32 %v482_v9, %v284_v6  ;;  %v477_v15 = vpop.permute.xlu0 %476  ;;  %v705_v16 = vmul.f32 %v482_v9, %v285_v7  ;;  %v306_v6 = vld [vmem:[%s1068_s19 + $0x240] sm:$0xff] }
  0xc3   : > { %v702_v17 = vmul.f32 %v477_v15, %v282_v10  ;;  %v703_v18 = vmul.f32 %v477_v15, %v283_v14  ;;  %v307_v10 = vld [vmem:[%s1068_s19 + $0x248] sm:$0xff]  ;;  %v334_v15 = vld [vmem:[%s1068_s19 + $0x320] sm:$0xff] }
  0xc4   : > { %845 = vst [vmem:[%s1078_s22 + $0x230] sm:$0xff] %v724_v11 }
  0xc5   : > { %846 = vst.msk [vmem:[%s1078_s22 + $0x238] sm:$0xff] %vm775_vm0, %v725_v12 }
  0xc6   : > { %825 = vst [vmem:[%s1078_s22 + $0x190] sm:$0xff] %v704_v13 }
  0xc7   : > { %826 = vst.msk [vmem:[%s1078_s22 + $0x198] sm:$0xff] %vm775_vm0, %v705_v16  ;;  %v335_v16 = vld [vmem:[%s1068_s19 + $0x328] sm:$0xff] }
  0xc8   : > { %823 = vst [vmem:[%s1078_s22 + $0x180] sm:$0xff] %v702_v17  ;;  %v314_v17 = vld [vmem:[%s1068_s19 + $0x280] sm:$0xff] }
  0xc9   : > { %824 = vst.msk [vmem:[%s1078_s22 + $0x188] sm:$0xff] %vm775_vm0, %v703_v18  ;;  %v547_v23 = vpop.permute.xlu2 %546  ;;  %v497_v24 = vpop.permute.xlu1 %496  ;;  %v315_v18 = vld [vmem:[%s1068_s19 + $0x288] sm:$0xff] }
  0xca   : > { %v730_v26 = vmul.f32 %v547_v23, %v310_v19  ;;  %v731_v27 = vmul.f32 %v547_v23, %v311_v20  ;;  %v710_v28 = vmul.f32 %v497_v24, %v290_v21  ;;  %v492_v30 = vpop.permute.xlu0 %491  ;;  %v711_v31 = vmul.f32 %v497_v24, %v291_v22  ;;  %v312_v21 = vld [vmem:[%s1068_s19 + $0x270] sm:$0xff] }
  0xcb   : > { %v708_v32 = vmul.f32 %v492_v30, %v288_v25  ;;  %v709_v33 = vmul.f32 %v492_v30, %v289_v29  ;;  %v313_v25 = vld [vmem:[%s1068_s19 + $0x278] sm:$0xff]  ;;  %v340_v30 = vld [vmem:[%s1068_s19 + $0x350] sm:$0xff] }
  0xcc   : > { %851 = vst [vmem:[%s1078_s22 + $0x260] sm:$0xff] %v730_v26 }
  0xcd   : > { %852 = vst.msk [vmem:[%s1078_s22 + $0x268] sm:$0xff] %vm775_vm0, %v731_v27 }
  0xce   : > { %831 = vst [vmem:[%s1078_s22 + $0x1c0] sm:$0xff] %v710_v28 }
  0xcf   : > { %832 = vst.msk [vmem:[%s1078_s22 + $0x1c8] sm:$0xff] %vm775_vm0, %v711_v31  ;;  %v341_v31 = vld [vmem:[%s1068_s19 + $0x358] sm:$0xff] }
  0xd0   : > { %829 = vst [vmem:[%s1078_s22 + $0x1b0] sm:$0xff] %v708_v32  ;;  %v320_v32 = vld [vmem:[%s1068_s19 + $0x2b0] sm:$0xff] }
  0xd1   : > { %830 = vst.msk [vmem:[%s1078_s22 + $0x1b8] sm:$0xff] %vm775_vm0, %v709_v33  ;;  %v562_v38 = vpop.permute.xlu2 %561  ;;  %v512_v39 = vpop.permute.xlu1 %511  ;;  %v321_v33 = vld [vmem:[%s1068_s19 + $0x2b8] sm:$0xff] }
  0xd2   : > { %v736_v41 = vmul.f32 %v562_v38, %v316_v34  ;;  %v737_v42 = vmul.f32 %v562_v38, %v317_v35  ;;  %v716_v43 = vmul.f32 %v512_v39, %v296_v36  ;;  %v507_v45 = vpop.permute.xlu0 %506  ;;  %v717_v46 = vmul.f32 %v512_v39, %v297_v37  ;;  %v318_v36 = vld [vmem:[%s1068_s19 + $0x2a0] sm:$0xff] }
  0xd3   : > { %v714_v47 = vmul.f32 %v507_v45, %v294_v40  ;;  %v715_v48 = vmul.f32 %v507_v45, %v295_v44  ;;  %v319_v40 = vld [vmem:[%s1068_s19 + $0x2a8] sm:$0xff]  ;;  %v346_v45 = vld [vmem:[%s1068_s19 + $0x380] sm:$0xff] }
  0xd4   : > { %857 = vst [vmem:[%s1078_s22 + $0x290] sm:$0xff] %v736_v41 }
  0xd5   : > { %858 = vst.msk [vmem:[%s1078_s22 + $0x298] sm:$0xff] %vm775_vm0, %v737_v42 }
  0xd6   : > { %837 = vst [vmem:[%s1078_s22 + $0x1f0] sm:$0xff] %v716_v43 }
  0xd7   : > { %838 = vst.msk [vmem:[%s1078_s22 + $0x1f8] sm:$0xff] %vm775_vm0, %v717_v46  ;;  %v347_v46 = vld [vmem:[%s1068_s19 + $0x388] sm:$0xff] }
  0xd8   : > { %835 = vst [vmem:[%s1078_s22 + $0x1e0] sm:$0xff] %v714_v47  ;;  %v326_v47 = vld [vmem:[%s1068_s19 + $0x2e0] sm:$0xff] }
  0xd9   : > { %836 = vst.msk [vmem:[%s1078_s22 + $0x1e8] sm:$0xff] %vm775_vm0, %v715_v48  ;;  %v577_v53 = vpop.permute.xlu2 %576  ;;  %v527_v54 = vpop.permute.xlu1 %526  ;;  %v327_v48 = vld [vmem:[%s1068_s19 + $0x2e8] sm:$0xff] }
  0xda   : > { %v742_v56 = vmul.f32 %v577_v53, %v322_v49  ;;  %v743_v57 = vmul.f32 %v577_v53, %v323_v50  ;;  %v722_v58 = vmul.f32 %v527_v54, %v302_v51  ;;  %v522_v60 = vpop.permute.xlu0 %521  ;;  %v723_v61 = vmul.f32 %v527_v54, %v303_v52  ;;  %v324_v51 = vld [vmem:[%s1068_s19 + $0x2d0] sm:$0xff] }
  0xdb   : > { %v720_v62 = vmul.f32 %v522_v60, %v300_v55  ;;  %v721_v63 = vmul.f32 %v522_v60, %v301_v59  ;;  %v325_v55 = vld [vmem:[%s1068_s19 + $0x2d8] sm:$0xff]  ;;  %v352_v60 = vld [vmem:[%s1068_s19 + $0x3b0] sm:$0xff] }
  0xdc   : > { %863 = vst [vmem:[%s1078_s22 + $0x2c0] sm:$0xff] %v742_v56 }
  0xdd   : > { %864 = vst.msk [vmem:[%s1078_s22 + $0x2c8] sm:$0xff] %vm775_vm0, %v743_v57 }
  0xde   : > { %843 = vst [vmem:[%s1078_s22 + $0x220] sm:$0xff] %v722_v58 }
  0xdf   : > { %844 = vst.msk [vmem:[%s1078_s22 + $0x228] sm:$0xff] %vm775_vm0, %v723_v61  ;;  %v353_v61 = vld [vmem:[%s1068_s19 + $0x3b8] sm:$0xff] }
  0xe0   : > { %841 = vst [vmem:[%s1078_s22 + $0x210] sm:$0xff] %v720_v62  ;;  %v332_v62 = vld [vmem:[%s1068_s19 + $0x310] sm:$0xff] }
  0xe1   : > { %842 = vst.msk [vmem:[%s1078_s22 + $0x218] sm:$0xff] %vm775_vm0, %v721_v63  ;;  %v592_v4 = vpop.permute.xlu2 %591  ;;  %v542_v5 = vpop.permute.xlu1 %541  ;;  %v333_v63 = vld [vmem:[%s1068_s19 + $0x318] sm:$0xff] }
  0xe2   : > { %v748_v7 = vmul.f32 %v592_v4, %v328_v0  ;;  %v749_v8 = vmul.f32 %v592_v4, %v329_v1  ;;  %v728_v9 = vmul.f32 %v542_v5, %v308_v2  ;;  %v537_v11 = vpop.permute.xlu0 %536  ;;  %v729_v12 = vmul.f32 %v542_v5, %v309_v3  ;;  %v330_v2 = vld [vmem:[%s1068_s19 + $0x300] sm:$0xff] }
  0xe3   : > { %v726_v13 = vmul.f32 %v537_v11, %v306_v6  ;;  %v727_v14 = vmul.f32 %v537_v11, %v307_v10  ;;  %v331_v6 = vld [vmem:[%s1068_s19 + $0x308] sm:$0xff]  ;;  %v338_v11 = vld [vmem:[%s1068_s19 + $0x340] sm:$0xff] }
  0xe4   : > { %869 = vst [vmem:[%s1078_s22 + $0x2f0] sm:$0xff] %v748_v7 }
  0xe5   : > { %870 = vst.msk [vmem:[%s1078_s22 + $0x2f8] sm:$0xff] %vm775_vm0, %v749_v8 }
  0xe6   : > { %849 = vst [vmem:[%s1078_s22 + $0x250] sm:$0xff] %v728_v9 }
  0xe7   : > { %850 = vst.msk [vmem:[%s1078_s22 + $0x258] sm:$0xff] %vm775_vm0, %v729_v12  ;;  %v339_v12 = vld [vmem:[%s1068_s19 + $0x348] sm:$0xff] }
  0xe8   : > { %847 = vst [vmem:[%s1078_s22 + $0x240] sm:$0xff] %v726_v13  ;;  %v336_v13 = vld [vmem:[%s1068_s19 + $0x330] sm:$0xff] }
  0xe9   : > { %848 = vst.msk [vmem:[%s1078_s22 + $0x248] sm:$0xff] %vm775_vm0, %v727_v14  ;;  %v607_v19 = vpop.permute.xlu2 %606  ;;  %v557_v20 = vpop.permute.xlu1 %556  ;;  %v337_v14 = vld [vmem:[%s1068_s19 + $0x338] sm:$0xff] }
  0xea   : > { %v754_v22 = vmul.f32 %v607_v19, %v334_v15  ;;  %v755_v23 = vmul.f32 %v607_v19, %v335_v16  ;;  %v734_v24 = vmul.f32 %v557_v20, %v314_v17  ;;  %v552_v26 = vpop.permute.xlu0 %551  ;;  %v735_v27 = vmul.f32 %v557_v20, %v315_v18 }
  0xeb   : > { %v732_v28 = vmul.f32 %v552_v26, %v312_v21  ;;  %v733_v29 = vmul.f32 %v552_v26, %v313_v25  ;;  %v344_v21 = vld [vmem:[%s1068_s19 + $0x370] sm:$0xff] }
  0xec   : > { %875 = vst [vmem:[%s1078_s22 + $0x320] sm:$0xff] %v754_v22  ;;  %v345_v22 = vld [vmem:[%s1068_s19 + $0x378] sm:$0xff] }
  0xed   : > { %876 = vst.msk [vmem:[%s1078_s22 + $0x328] sm:$0xff] %vm775_vm0, %v755_v23  ;;  %v342_v23 = vld [vmem:[%s1068_s19 + $0x360] sm:$0xff] }
  0xee   : > { %855 = vst [vmem:[%s1078_s22 + $0x280] sm:$0xff] %v734_v24  ;;  %v343_v24 = vld [vmem:[%s1068_s19 + $0x368] sm:$0xff] }
  0xef   : > { %856 = vst.msk [vmem:[%s1078_s22 + $0x288] sm:$0xff] %vm775_vm0, %v735_v27 }
  0xf0   : > { %853 = vst [vmem:[%s1078_s22 + $0x270] sm:$0xff] %v732_v28 }
  0xf1   : > { %854 = vst.msk [vmem:[%s1078_s22 + $0x278] sm:$0xff] %vm775_vm0, %v733_v29  ;;  %v622_v34 = vpop.permute.xlu2 %621  ;;  %v572_v35 = vpop.permute.xlu1 %571 }
  0xf2   : > { %v760_v37 = vmul.f32 %v622_v34, %v340_v30  ;;  %v761_v38 = vmul.f32 %v622_v34, %v341_v31  ;;  %v740_v39 = vmul.f32 %v572_v35, %v320_v32  ;;  %v567_v41 = vpop.permute.xlu0 %566  ;;  %v741_v42 = vmul.f32 %v572_v35, %v321_v33  ;;  %v350_v31 = vld [vmem:[%s1068_s19 + $0x3a0] sm:$0xff]  ;;  %v351_v32 = vld [vmem:[%s1068_s19 + $0x3a8] sm:$0xff]  ;;  %v348_v33 = vld [vmem:[%s1068_s19 + $0x390] sm:$0xff] }
  0xf3   : > { %v738_v43 = vmul.f32 %v567_v41, %v318_v36  ;;  %v739_v44 = vmul.f32 %v567_v41, %v319_v40  ;;  %v349_v34 = vld [vmem:[%s1068_s19 + $0x398] sm:$0xff] }
  0xf4   : > { %881 = vst [vmem:[%s1078_s22 + $0x350] sm:$0xff] %v760_v37 }
  0xf5   : > { %882 = vst.msk [vmem:[%s1078_s22 + $0x358] sm:$0xff] %vm775_vm0, %v761_v38 }
  0xf6   : > { %861 = vst [vmem:[%s1078_s22 + $0x2b0] sm:$0xff] %v740_v39 }
  0xf7   : > { %862 = vst.msk [vmem:[%s1078_s22 + $0x2b8] sm:$0xff] %vm775_vm0, %v741_v42 }
  0xf8   : > { %859 = vst [vmem:[%s1078_s22 + $0x2a0] sm:$0xff] %v738_v43 }
  0xf9   : > { %860 = vst.msk [vmem:[%s1078_s22 + $0x2a8] sm:$0xff] %vm775_vm0, %v739_v44  ;;  %v637_v49 = vpop.permute.xlu2 %636  ;;  %v587_v50 = vpop.permute.xlu1 %586 }
  0xfa   : > { %v766_v52 = vmul.f32 %v637_v49, %v346_v45  ;;  %v767_v53 = vmul.f32 %v637_v49, %v347_v46  ;;  %v746_v54 = vmul.f32 %v587_v50, %v326_v47  ;;  %v582_v56 = vpop.permute.xlu0 %581  ;;  %v747_v57 = vmul.f32 %v587_v50, %v327_v48 }
  0xfb   : > { %v744_v58 = vmul.f32 %v582_v56, %v324_v51  ;;  %v745_v59 = vmul.f32 %v582_v56, %v325_v55 }
  0xfc   : > { %887 = vst [vmem:[%s1078_s22 + $0x380] sm:$0xff] %v766_v52 }
  0xfd   : > { %888 = vst.msk [vmem:[%s1078_s22 + $0x388] sm:$0xff] %vm775_vm0, %v767_v53 }
  0xfe   : > { %867 = vst [vmem:[%s1078_s22 + $0x2e0] sm:$0xff] %v746_v54 }
  0xff   : > { %868 = vst.msk [vmem:[%s1078_s22 + $0x2e8] sm:$0xff] %vm775_vm0, %v747_v57 }
 0x100   : > { %865 = vst [vmem:[%s1078_s22 + $0x2d0] sm:$0xff] %v744_v58 }
 0x101   : > { %866 = vst.msk [vmem:[%s1078_s22 + $0x2d8] sm:$0xff] %vm775_vm0, %v745_v59  ;;  %v652_v0 = vpop.permute.xlu2 %651  ;;  %v602_v1 = vpop.permute.xlu1 %601 }
 0x102   : > { %v772_v3 = vmul.f32 %v652_v0, %v352_v60  ;;  %v773_v4 = vmul.f32 %v652_v0, %v353_v61  ;;  %v752_v5 = vmul.f32 %v602_v1, %v332_v62  ;;  %v597_v7 = vpop.permute.xlu0 %596  ;;  %v753_v8 = vmul.f32 %v602_v1, %v333_v63 }
 0x103   : > { %v750_v9 = vmul.f32 %v597_v7, %v330_v2  ;;  %v751_v10 = vmul.f32 %v597_v7, %v331_v6 }
 0x104   : > { %893 = vst [vmem:[%s1078_s22 + $0x3b0] sm:$0xff] %v772_v3 }
 0x105   : > { %894 = vst.msk [vmem:[%s1078_s22 + $0x3b8] sm:$0xff] %vm775_vm0, %v773_v4 }
 0x106   : > { %873 = vst [vmem:[%s1078_s22 + $0x310] sm:$0xff] %v752_v5 }
 0x107   : > { %874 = vst.msk [vmem:[%s1078_s22 + $0x318] sm:$0xff] %vm775_vm0, %v753_v8 }
 0x108   : > { %871 = vst [vmem:[%s1078_s22 + $0x300] sm:$0xff] %v750_v9 }
 0x109   : > { %872 = vst.msk [vmem:[%s1078_s22 + $0x308] sm:$0xff] %vm775_vm0, %v751_v10  ;;  %v617_v15 = vpop.permute.xlu1 %616 }
 0x10a   : > { %v758_v16 = vmul.f32 %v617_v15, %v338_v11  ;;  %v759_v17 = vmul.f32 %v617_v15, %v339_v12  ;;  %v612_v18 = vpop.permute.xlu0 %611 }
 0x10b   : > { %v756_v19 = vmul.f32 %v612_v18, %v336_v13  ;;  %v757_v20 = vmul.f32 %v612_v18, %v337_v14 }
 0x10c   : > { %879 = vst [vmem:[%s1078_s22 + $0x340] sm:$0xff] %v758_v16 }
 0x10d   : > { %880 = vst.msk [vmem:[%s1078_s22 + $0x348] sm:$0xff] %vm775_vm0, %v759_v17 }
 0x10e   : > { %877 = vst [vmem:[%s1078_s22 + $0x330] sm:$0xff] %v756_v19 }
 0x10f   : > { %878 = vst.msk [vmem:[%s1078_s22 + $0x338] sm:$0xff] %vm775_vm0, %v757_v20 }
 0x111   : > { %v632_v25 = vpop.permute.xlu1 %631 }
 0x112   : > { %v764_v26 = vmul.f32 %v632_v25, %v344_v21  ;;  %v765_v27 = vmul.f32 %v632_v25, %v345_v22  ;;  %v627_v28 = vpop.permute.xlu0 %626 }
 0x113   : > { %v762_v29 = vmul.f32 %v627_v28, %v342_v23  ;;  %v763_v30 = vmul.f32 %v627_v28, %v343_v24 }
 0x114   : > { %885 = vst [vmem:[%s1078_s22 + $0x370] sm:$0xff] %v764_v26 }
 0x115   : > { %886 = vst.msk [vmem:[%s1078_s22 + $0x378] sm:$0xff] %vm775_vm0, %v765_v27 }
 0x116   : > { %883 = vst [vmem:[%s1078_s22 + $0x360] sm:$0xff] %v762_v29 }
 0x117   : > { %884 = vst.msk [vmem:[%s1078_s22 + $0x368] sm:$0xff] %vm775_vm0, %v763_v30 }
 0x119   : > { %v647_v35 = vpop.permute.xlu1 %646 }
 0x11a   : > { %v770_v36 = vmul.f32 %v647_v35, %v350_v31  ;;  %v771_v37 = vmul.f32 %v647_v35, %v351_v32  ;;  %v642_v38 = vpop.permute.xlu0 %641 }
 0x11b   : > { %v768_v39 = vmul.f32 %v642_v38, %v348_v33  ;;  %v769_v40 = vmul.f32 %v642_v38, %v349_v34 }
 0x11c   : > { %891 = vst [vmem:[%s1078_s22 + $0x3a0] sm:$0xff] %v770_v36 }
 0x11d   : > { %892 = vst.msk [vmem:[%s1078_s22 + $0x3a8] sm:$0xff] %vm775_vm0, %v771_v37 }
 0x11e   : > { %889 = vst [vmem:[%s1078_s22 + $0x390] sm:$0xff] %v768_v39 }
 0x11f   : > { %890 = vst.msk [vmem:[%s1078_s22 + $0x398] sm:$0xff] %vm775_vm0, %v769_v40 }
 0x120 PF: > { %s12_s9 = sadd.s32 1, %s997_s9  }
 0x121   : > { %p9_p4 = scmp.ge.s32.totalorder %s12_s9, 4  }
 0x123   :  { %11 = sbr.rel (!%p9_p4) target bundleno = 1 (0x1), region = 61 }

</bundles_post_ra>
